<compile_context>
chip_gen: v7x
topology: tpu7x:2x2x1
jax: 0.10.0
libtpu: 0.0.40
codegen_flags: <defaults>
</compile_context>

<pallas_src>
import math

import jax
import jax.numpy as jnp
from jax.experimental import pallas as pl
from jax.experimental.pallas import tpu as pltpu


def _evidence_kernel(x_ref, w_ref, b_ref, o_ref):
    # x_ref: (R, g*C)      grouped input row tile
    # w_ref: (g*C, g*C*F)  block-diagonal scatter weight (VMEM-resident)
    # b_ref: (1, g*C*F)    group-tiled bias (VMEM-resident)
    # o_ref: (R, g*C*F)    lane-dense output tile (last dim multiple of 128)
    o_ref[...] = (
        jnp.dot(
            x_ref[...],
            w_ref[...],
            preferred_element_type=jnp.float32,
            precision=jax.lax.Precision.HIGHEST,
        )
        + b_ref[...]
    ).astype(o_ref.dtype)


def _round_up(n, m):
    return ((n + m - 1) // m) * m


def _pick_group(rows, C, F, itemsize, max_w_bytes=8 * 1024 * 1024):
    """Pick row-group size g so g*C*F is a multiple of 128 lanes, g divides
    rows (no padding / no output slice-copy), and the block-diagonal scatter
    weight (g*C, g*C*F) stays small.  Falls back to g=1 (still correct)."""
    CF = C * F
    g_min = 128 // math.gcd(CF, 128)            # minimal g for 128-lane density
    m_max = max(1, 512 // max(g_min * CF, 1))   # grow toward ~512 output lanes
    for m in range(m_max, 0, -1):
        g = g_min * m
        w_bytes = (g * C) * (g * CF) * itemsize
        if rows % g == 0 and w_bytes <= max_w_bytes:
            return g
    return 1


def evidence_machine_kernel(x, c_weight, c_bias, *, out_dtype=None):
    """x: (B, T, C); c_weight / c_bias: (C, F).  Returns (B, T, C, F)."""
    B, T, C = x.shape
    Cw, F = c_weight.shape
    assert Cw == C and c_bias.shape == (C, F)
    out_dtype = x.dtype if out_dtype is None else out_dtype
    itemsize = jnp.dtype(x.dtype).itemsize

    CF = C * F
    rows = B * T
    g = _pick_group(rows, C, F, itemsize)
    rows_g = rows // g
    gC, gCF = g * C, g * CF

    # Metadata-only (row-major) grouping: x2[R, gi*C + c] == x_flat[R*g+gi, c].
    x2 = x.reshape(rows_g, gC)

    # Scatter weight: Wg[c, d*F + f] = W[c, f] if d == c else 0.
    wg = (jnp.eye(C, dtype=c_weight.dtype)[:, :, None]
          * c_weight[None, :, :]).reshape(C, CF)
    # Block-diagonal over the g grouped rows: one MXU matmul reproduces the
    # per-channel broadcast exactly (one nonzero product per output element).
    w_big = jnp.kron(jnp.eye(g, dtype=c_weight.dtype), wg) if g > 1 else wg
    b_big = jnp.tile(c_bias.reshape(1, CF), (1, g))

    # ---- VMEM-budgeted row-tile size (lane padding + double buffering) ----
    try:
        vmem_cap = int(pltpu.get_tpu_info().vmem_capacity_bytes)
    except Exception:
        vmem_cap = 64 * 1024 * 1024                       # v7x-safe fallback
    # <=48 MiB on v7x (64 MiB physical), 64 MiB on v5e/v6e (128 MiB physical).
    vmem_limit = min(max(vmem_cap - 16 * 1024 * 1024, 32 * 1024 * 1024),
                     64 * 1024 * 1024)

    lane_in = _round_up(gC, 128)                # x tile is lane-padded to 128
    lane_out = _round_up(gCF, 128)
    fixed_bytes = 2 * (_round_up(gC, 8) + 8) * lane_out * itemsize   # W + bias
    per_row_bytes = 2 * (lane_in + lane_out) * itemsize              # 2x dbl-buf
    budget = max(vmem_limit - fixed_bytes - 4 * 1024 * 1024, 2 * 1024 * 1024)

    target_out_bytes = 8 * 1024 * 1024          # ~8 MiB of output per grid step
    block_rows = min(rows_g,
                     max(8, target_out_bytes // (lane_out * itemsize)),
                     max(8, budget // per_row_bytes))
    if block_rows < rows_g:
        block_rows = max(8, (block_rows // 8) * 8)
        num_tiles = pl.cdiv(rows_g, block_rows)
        # Prefer an even tile count so both v7x TensorCores get equal work.
        if num_tiles > 1 and num_tiles % 2 == 1:
            block_rows = max(8, _round_up(pl.cdiv(rows_g, num_tiles + 1), 8))
    grid = (pl.cdiv(rows_g, block_rows),)

    out2 = pl.pallas_call(
        _evidence_kernel,
        out_shape=jax.ShapeDtypeStruct((rows_g, gCF), out_dtype),
        grid=grid,
        in_specs=[
            pl.BlockSpec((block_rows, gC), lambda i: (i, 0)),
            pl.BlockSpec((gC, gCF), lambda i: (0, 0)),   # VMEM-resident weight
            pl.BlockSpec((1, gCF), lambda i: (0, 0)),    # VMEM-resident bias
        ],
        out_specs=pl.BlockSpec((block_rows, gCF), lambda i: (i, 0)),
        compiler_params=pltpu.CompilerParams(
            dimension_semantics=("parallel",),           # shard tiles across TCs
            vmem_limit_bytes=vmem_limit,
        ),
        cost_estimate=pl.CostEstimate(
            flops=2 * rows * CF,
            transcendentals=0,
            bytes_accessed=(rows * C + rows * CF + gC * gCF + gCF) * itemsize,
        ),
    )(x2, w_big, b_big)

    # Metadata-only reshape back to the PyTorch output layout.
    return out2.reshape(B, T, C, F)


if __name__ == "__main__":
    # Module hyperparameters: C channels, F exponent so feature dim = 2**F.
    B, T, C, F_exp = 2, 8, 4, 3
    F = 2 ** F_exp

    key = jax.random.PRNGKey(0)
    kx, kw, kb = jax.random.split(key, 3)

    x = jax.random.normal(kx, (B, T, C), dtype=jnp.float32)
    c_weight = jax.random.normal(kw, (C, F), dtype=jnp.float32)
    c_bias = jax.random.normal(kb, (C, F), dtype=jnp.float32)

    out = jax.block_until_ready(evidence_machine_kernel(x, c_weight, c_bias))

    # Exact f32 broadcast reference (no matmul precision ambiguity).
    ref = x[..., None] * c_weight[None, None, :, :] + c_bias[None, None, :, :]
    assert out.shape == (B, T, C, F)
    assert jnp.allclose(out, ref, atol=1e-5, rtol=1e-5), "mismatch vs reference"

    print("KERNEL_OK")
</pallas_src>

<mosaic_0001>
module attributes {stable_mosaic.version = 11 : i64} {
  func.func @_evidence_kernel(%arg0: i32, %arg1: memref<1x64xf32, #tpu.memory_space<vmem>>, %arg2: memref<64x512xf32, #tpu.memory_space<vmem>>, %arg3: memref<1x512xf32, #tpu.memory_space<vmem>>, %arg4: memref<1x512xf32, #tpu.memory_space<vmem>>) attributes {dimension_semantics = [#tpu.dimension_semantics<parallel>], iteration_bounds = array<i64: 1>, scalar_prefetch = 0 : i64, scratch_operands = 0 : i64, tpu.core_type = #tpu.core_type<tc>, window_params = [{transform_indices = @transform_0, window_bounds = array<i64: 1, 64>}, {pipeline_mode = #tpu.pipeline_mode<synchronous>, transform_indices = @transform_1, window_bounds = array<i64: 64, 512>}, {pipeline_mode = #tpu.pipeline_mode<synchronous>, transform_indices = @transform_2, window_bounds = array<i64: 1, 512>}, {transform_indices = @transform_3, window_bounds = array<i64: 1, 512>}]} {
    %c0 = arith.constant 0 : index
    %c0_0 = arith.constant 0 : index
    %0 = vector.load %arg1[%c0, %c0_0] : memref<1x64xf32, #tpu.memory_space<vmem>>, vector<1x64xf32>
    %c0_1 = arith.constant 0 : index
    %c0_2 = arith.constant 0 : index
    %1 = vector.load %arg2[%c0_1, %c0_2] : memref<64x512xf32, #tpu.memory_space<vmem>>, vector<64x512xf32>
    %cst = arith.constant dense<0.000000e+00> : vector<1x512xf32>
    %2 = tpu.matmul %0, %1, %cst {dimension_numbers = #tpu.dot_dimension_numbers<[1], [0], [0], [1], [0, 0, 1, 1], [], []>, precision = #tpu.contract_precision<fp32>} : vector<1x64xf32>, vector<64x512xf32>, vector<1x512xf32> -> vector<1x512xf32>
    %c0_3 = arith.constant 0 : index
    %c0_4 = arith.constant 0 : index
    %3 = vector.load %arg3[%c0_3, %c0_4] : memref<1x512xf32, #tpu.memory_space<vmem>>, vector<1x512xf32>
    %4 = arith.addf %2, %3 : vector<1x512xf32>
    %c0_5 = arith.constant 0 : index
    %c0_6 = arith.constant 0 : index
    %5 = vector.load %arg4[%c0_5, %c0_6] : memref<1x512xf32, #tpu.memory_space<vmem>>, vector<1x512xf32>
    tpu.vector_store %arg4[%c0_5, %c0_6], %4 {strides = array<i32>} : memref<1x512xf32, #tpu.memory_space<vmem>>, vector<1x512xf32>,
    return
  }
  func.func @transform_0(%arg0: i32) -> (i32, i32) {
    %c0_i32 = arith.constant 0 : i32
    %c0_i32_0 = arith.constant 0 : i32
    return %arg0, %c0_i32 : i32, i32
  }
  func.func @transform_1(%arg0: i32) -> (i32, i32) {
    %c0_i32 = arith.constant 0 : i32
    %c0_i32_0 = arith.constant 0 : i32
    %c0_i32_1 = arith.constant 0 : i32
    return %c0_i32, %c0_i32_0 : i32, i32
  }
  func.func @transform_2(%arg0: i32) -> (i32, i32) {
    %c0_i32 = arith.constant 0 : i32
    %c0_i32_0 = arith.constant 0 : i32
    %c0_i32_1 = arith.constant 0 : i32
    return %c0_i32, %c0_i32_0 : i32, i32
  }
  func.func @transform_3(%arg0: i32) -> (i32, i32) {
    %c0_i32 = arith.constant 0 : i32
    %c0_i32_0 = arith.constant 0 : i32
    return %arg0, %c0_i32 : i32, i32
  }
}

</mosaic_0001>

<bundles_post_ra>
// kernel: tpu_custom_call.1
= control target key start
LH: loop header
LB: loop body
LE: loop exit
PB: predicated region body
PF: predicated region fallthrough
CT: control target
= control target key end

     0   :  { %8 = vsyncpa [#allocation3], 0  ;;  %s2213_s0 = inlined_call_operand.hbm [shape: f32[1,64], index: 0, kind: input, shape index: {}]   ;;  %s2214_s1 = inlined_call_operand.hbm [shape: f32[64,512], index: 1, kind: input, shape index: {}]   ;;  %s2215_s2 = inlined_call_operand.vmem [shape: f32[1,512], index: 2, kind: input, shape index: {}]   ;;  %s2216_s3 = inlined_call_operand.hbm [shape: f32[1,512], index: 3, kind: output, shape index: {}]  }
   0x1   :  { %9 = vsyncpa [#allocation6], 0 }
   0x2   :  { %10 = vsyncpa [#allocation4], 0  ;;  %s1739_s12 = smov [#allocation2]   ;;  %s1740_s14 = smov [#allocation5]  }
   0x3   :  { %s17_s13 = sshll.u32 %s1739_s12, 4  ;;  %s26_s15 = sshll.u32 %s1740_s14, 4  ;;  %s18_s13 = int_to_ptr.vmem [resolvable:$true] %s17_s13  ;;  %s1766_s15 = int_to_ptr.vmem [resolvable:$true] %s26_s15 }
   0x4   :  { %s1667_s18 = scalar_lea.hbm %s2213_s0, 16 }
   0x5   :  { %p1668_p0 = scmp.ne.s32.totalorder %s2213_s0, %s1667_s18  ;;  %p1671_p1 = scmp.lt.u32.totalorder %s1667_s18, %s2213_s0 }
   0x7   :  { %p1673_p2 = pnand %p1671_p1, %p1668_p0 }
   0x9   :  { %1676 = shalt.err (!%p1673_p2)
}
   0xa   :  { %s1677_s23 = scalar_lea.vmem %s18_s13, 16  ;;  %s1681_s24 = scalar_lea.vmem %s18_s13, 32 }
   0xb   :  { %p1678_p3 = scmp.ne.s32.totalorder %s18_s13, %s1677_s23  ;;  %p1682_p4 = scmp.lt.s32.totalorder %s18_s13, %s18_s13 }
   0xc   :  { %p1683_p5 = scmp.lt.s32.totalorder %s1681_s24, %s1677_s23 }
   0xe   :  { %p1684_p6 = por %p1683_p5, %p1682_p4 }
  0x10   :  { %p1685_p7 = pnand %p1684_p6, %p1678_p3 }
  0x12   :  { %1688 = shalt.err (!%p1685_p7)
}
  0x13   :  { %20 = dma.hbm_to_vmem [thread:$0]  %s2213_s0, 16, %s18_s13, [#allocation3]  }
  0x14   :  { %s1689_s29 = scalar_lea.hbm %s2214_s1, 4096 }
  0x15   :  { %p1690_p8 = scmp.ne.s32.totalorder %s2214_s1, %s1689_s29  ;;  %p1693_p9 = scmp.lt.u32.totalorder %s1689_s29, %s2214_s1 }
  0x17   :  { %p1695_p10 = pnand %p1693_p9, %p1690_p8 }
  0x19   :  { %1698 = shalt.err (!%p1695_p10)
}
  0x1a   :  { %s1699_s7 = scalar_lea.vmem %s1766_s15, 4096  ;;  %p1704_p12 = scmp.lt.s32.totalorder %s1766_s15, %s1766_s15 }
  0x1b   :  { %p1700_p11 = scmp.ne.s32.totalorder %s1766_s15, %s1699_s7  ;;  %p1705_p13 = scmp.lt.s32.totalorder %s1699_s7, %s1699_s7 }
  0x1d   :  { %p1706_p0 = por %p1705_p13, %p1704_p12 }
  0x1f   :  { %p1707_p1 = pnand %p1706_p0, %p1700_p11 }
  0x21   :  { %1710 = shalt.err (!%p1707_p1)
}
  0x22   :  { %s1741_s0 = smov 512   ;;  %s1742_s8 = smov 32  }
  0x23   :  { %32 = dma.hbm_to_vmem [thread:$0]  %s2214_s1, 4096, %s1766_s15, [#allocation6], %s1741_s0, %s1741_s0, %s1742_s8  }
  0x24   :  { %1733 = dma.done.wait [#allocation3], 16  }
  0x25   :  { %1734 = vsyncadd [#allocation3], 4294967280 }
  0x26   :  { %1735 = dma.done.wait [#allocation6], 4096  }
  0x27   :  { %1736 = vsyncadd [#allocation6], 4294963200  ;;  %v2220_v0 = vmov 0.0   ;;  %v43_v1 = vld [vmem:[#allocation5 + $0x8] sm:$0xff]  ;;  %v45_v3 = vld [vmem:[#allocation5 + $0x18] sm:$0xff]  ;;  %vm96_vm0 = vcmask 523264  }
  0x28   :  { %180 = vmatprep.mubr.f32.mxu0 %v2220_v0  ;;  %827 = vmatprep.mubr.f32.mxu1 %v2220_v0  ;;  %v47_v2 = vld [vmem:[#allocation5 + $0x28] sm:$0xff]  ;;  %v100_v4 = vand.u32 4294901760, %v43_v1  ;;  %v49_v6 = vld [vmem:[#allocation5 + $0x38] sm:$0xff]  ;;  %v747_v7 = vand.u32 4294901760, %v45_v3  ;;  %v42_v8 = vld [vmem:[#allocation5] sm:$0xff] }
  0x29   :  { %v104_v5 = vand.u32 4294901760, %v47_v2  ;;  %v46_v9 = vld [vmem:[#allocation5 + $0x20] sm:$0xff]  ;;  %v751_v10 = vand.u32 4294901760, %v49_v6  ;;  %v102_v11 = vand.u32 4294901760, %v42_v8  ;;  %v44_v13 = vld [vmem:[#allocation5 + $0x10] sm:$0xff]  ;;  %v51_v15 = vld [vmem:[#allocation5 + $0x48] sm:$0xff] }
  0x2a   :  { %v106_v12 = vand.u32 4294901760, %v46_v9  ;;  %v48_v14 = vld [vmem:[#allocation5 + $0x30] sm:$0xff]  ;;  %v1801_v17 = vsub.f32 %v43_v1, %v100_v4  ;;  %v1805_v19 = vsub.f32 %v45_v3, %v747_v7  ;;  %v55_v20 = vld [vmem:[#allocation5 + $0x68] sm:$0xff]  ;;  %v53_v21 = vld [vmem:[#allocation5 + $0x58] sm:$0xff]  ;;  %v749_v29 = vand.u32 4294901760, %v44_v13 }
  0x2b   :  { %v1799_v16 = vpack.c.bf16 %v104_v5, %v100_v4  ;;  %v1803_v18 = vsub.f32 %v47_v2, %v104_v5  ;;  %v57_v22 = vld [vmem:[#allocation5 + $0x78] sm:$0xff]  ;;  %v1807_v23 = vpack.c.bf16 %v751_v10, %v747_v7  ;;  %v1809_v24 = vsub.f32 %v49_v6, %v751_v10  ;;  %v50_v27 = vld [vmem:[#allocation5 + $0x40] sm:$0xff]  ;;  %v52_v37 = vld [vmem:[#allocation5 + $0x50] sm:$0xff] }
  0x2c   :  { %v1811_v25 = vpack.c.bf16 %v106_v12, %v102_v11  ;;  %v1813_v26 = vsub.f32 %v42_v8, %v102_v11  ;;  %v1816_v28 = vsub.f32 %v46_v9, %v106_v12  ;;  %v753_v30 = vand.u32 4294901760, %v48_v14  ;;  %v54_v32 = vld [vmem:[#allocation5 + $0x60] sm:$0xff]  ;;  %v56_v38 = vld [vmem:[#allocation5 + $0x70] sm:$0xff]  ;;  %v59_v43 = vld [vmem:[#allocation5 + $0x88] sm:$0xff] }
  0x2d   :  { %1445 = vmatprep.subr.bf16.mxu0 %v1799_v16  ;;  %v108_v31 = vand.u32 4294901760, %v51_v15  ;;  %1541 = vmatprep.subr.bf16.mxu1 %v1807_v23  ;;  %v112_v33 = vand.u32 4294901760, %v55_v20  ;;  %v755_v34 = vand.u32 4294901760, %v53_v21  ;;  %v759_v35 = vand.u32 4294901760, %v57_v22  ;;  %v63_v44 = vld [vmem:[#allocation5 + $0xa8] sm:$0xff]  ;;  %v61_v45 = vld [vmem:[#allocation5 + $0x98] sm:$0xff] }
  0x2e   :  { %1447 = vmatpush1.bf16.msra.mxu0 %v1811_v25  ;;  %v110_v36 = vand.u32 4294901760, %v50_v27  ;;  %v1820_v39 = vpack.c.bf16 %v753_v30, %v749_v29  ;;  %v1822_v40 = vsub.f32 %v44_v13, %v749_v29  ;;  %v1824_v41 = vsub.f32 %v48_v14, %v753_v30  ;;  %v65_v50 = vld [vmem:[#allocation5 + $0xb8] sm:$0xff]  ;;  %v58_v59 = vld [vmem:[#allocation5 + $0x80] sm:$0xff]  ;;  %v60_v2 = vld [vmem:[#allocation5 + $0x90] sm:$0xff] }
  0x2f   :  { %v1826_v42 = vsub.f32 %v51_v15, %v108_v31  ;;  %v1828_v46 = vpack.c.bf16 %v112_v33, %v108_v31  ;;  %v1830_v47 = vsub.f32 %v55_v20, %v112_v33  ;;  %v1832_v48 = vpack.c.bf16 %v759_v35, %v755_v34  ;;  %v62_v60 = vld [vmem:[#allocation5 + $0xa0] sm:$0xff]  ;;  %v64_v3 = vld [vmem:[#allocation5 + $0xb0] sm:$0xff]  ;;  %v67_v4 = vld [vmem:[#allocation5 + $0xc8] sm:$0xff] }
  0x30   :  { %v1834_v49 = vsub.f32 %v53_v21, %v755_v34  ;;  %1543 = vmatpush1.bf16.msra.mxu1 %v1820_v39  ;;  %v1837_v51 = vsub.f32 %v57_v22, %v759_v35  ;;  %v114_v52 = vand.u32 4294901760, %v54_v32  ;;  %v1839_v53 = vsub.f32 %v50_v27, %v110_v36  ;;  %v71_v9 = vld [vmem:[#allocation5 + $0xe8] sm:$0xff]  ;;  %v69_v10 = vld [vmem:[#allocation5 + $0xd8] sm:$0xff]  ;;  %v66_v33 = vld [vmem:[#allocation5 + $0xc0] sm:$0xff] }
  0x31   :  { %v757_v54 = vand.u32 4294901760, %v52_v37  ;;  %1449 = vmatprep.subr.bf16.mxu0 %v1828_v46  ;;  %1545 = vmatprep.subr.bf16.mxu1 %v1832_v48  ;;  %v761_v55 = vand.u32 4294901760, %v56_v38  ;;  %v116_v56 = vand.u32 4294901760, %v59_v43  ;;  %v120_v57 = vand.u32 4294901760, %v63_v44  ;;  %v73_v11 = vld [vmem:[#allocation5 + $0xf8] sm:$0xff] }
  0x32   :  { %v763_v58 = vand.u32 4294901760, %v61_v45  ;;  %v1843_v61 = vpack.c.bf16 %v114_v52, %v110_v36  ;;  %v1845_v62 = vsub.f32 %v54_v32, %v114_v52  ;;  %v767_v1 = vand.u32 4294901760, %v65_v50 }
  0x33   :  { %v1847_v63 = vsub.f32 %v52_v37, %v757_v54  ;;  %v1849_v5 = vpack.c.bf16 %v761_v55, %v757_v54  ;;  %v1851_v6 = vsub.f32 %v56_v38, %v761_v55  ;;  %v1853_v7 = vpack.c.bf16 %v120_v57, %v116_v56  ;;  %v70_v38 = vld [vmem:[#allocation5 + $0xe0] sm:$0xff] }
  0x34   :  { %v1855_v8 = vsub.f32 %v59_v43, %v116_v56  ;;  %1451 = vmatpush1.bf16.msra.mxu0 %v1843_v61  ;;  %v1858_v12 = vsub.f32 %v63_v44, %v120_v57  ;;  %v1860_v13 = vpack.c.bf16 %v767_v1, %v763_v58  ;;  %v1862_v14 = vsub.f32 %v61_v45, %v763_v58  ;;  %v68_v43 = vld [vmem:[#allocation5 + $0xd0] sm:$0xff] }
  0x35   :  { %v1864_v15 = vsub.f32 %v65_v50, %v767_v1  ;;  %1547 = vmatpush1.bf16.msra.mxu1 %v1849_v5  ;;  %1453 = vmatprep.subr.bf16.mxu0 %v1853_v7  ;;  %v118_v20 = vand.u32 4294901760, %v58_v59  ;;  %v122_v21 = vand.u32 4294901760, %v62_v60  ;;  %v765_v22 = vand.u32 4294901760, %v60_v2  ;;  %v72_v44 = vld [vmem:[#allocation5 + $0xf0] sm:$0xff] }
  0x36   :  { %v769_v27 = vand.u32 4294901760, %v64_v3  ;;  %1549 = vmatprep.subr.bf16.mxu1 %v1860_v13  ;;  %v124_v29 = vand.u32 4294901760, %v67_v4  ;;  %v128_v30 = vand.u32 4294901760, %v71_v9  ;;  %v771_v31 = vand.u32 4294901760, %v69_v10 }
  0x37   :  { %v775_v32 = vand.u32 4294901760, %v73_v11  ;;  %v1869_v34 = vpack.c.bf16 %v122_v21, %v118_v20  ;;  %v1871_v35 = vsub.f32 %v58_v59, %v118_v20  ;;  %v1873_v36 = vsub.f32 %v62_v60, %v122_v21 }
  0x38   :  { %v1875_v37 = vpack.c.bf16 %v769_v27, %v765_v22  ;;  %v1877_v45 = vsub.f32 %v60_v2, %v765_v22  ;;  %v1879_v50 = vsub.f32 %v64_v3, %v769_v27  ;;  %v1881_v52 = vpack.c.bf16 %v128_v30, %v124_v29 }
  0x39   :  { %v1883_v54 = vsub.f32 %v67_v4, %v124_v29  ;;  %1455 = vmatpush1.bf16.msra.mxu0 %v1869_v34  ;;  %v1887_v55 = vsub.f32 %v71_v9, %v128_v30  ;;  %v1889_v56 = vpack.c.bf16 %v775_v32, %v771_v31  ;;  %v1891_v57 = vsub.f32 %v69_v10, %v771_v31  ;;  %v41_v10 = vld [vmem:[#allocation2] sm:$0x1] }
  0x3a   :  { %2260 = vst [vmem:[#allocation11_spill] sm:$0xff] %v1875_v37  ;;  %2261 = vst [vmem:[#allocation12_spill] sm:$0xff] %v1881_v52  ;;  %1551 = vmatpush1.bf16.msra.mxu1 %v1875_v37  ;;  %v126_v58 = vand.u32 4294901760, %v66_v33  ;;  %1457 = vmatprep.subr.bf16.mxu0 %v1881_v52  ;;  %v1894_v59 = vsub.f32 %v73_v11, %v775_v32  ;;  %v130_v60 = vand.u32 4294901760, %v70_v38  ;;  %v773_v1 = vand.u32 4294901760, %v68_v43 }
  0x3b   :  { %2262 = vst [vmem:[#allocation13_spill] sm:$0xff] %v1889_v56  ;;  %v777_v2 = vand.u32 4294901760, %v72_v44  ;;  %1553 = vmatprep.subr.bf16.mxu1 %v1889_v56  ;;  %v2219_v4 = vand.u32 4294901760, %v1801_v17  ;;  %v2218_v9 = vand.u32 4294901760, %v1803_v18  ;;  %v2217_v20 = vand.u32 4294901760, %v1805_v19 }
  0x3c   :  { %v1897_v3 = vsub.f32 %v66_v33, %v126_v58  ;;  %v1902_v21 = vpack.c.bf16 %v130_v60, %v126_v58  ;;  %v1904_v22 = vsub.f32 %v70_v38, %v130_v60  ;;  %v1908_v27 = vsub.f32 %v68_v43, %v773_v1 }
  0x3d   :  { %v1906_v11 = vpack.c.bf16 %v777_v2, %v773_v1  ;;  %v1910_v29 = vsub.f32 %v72_v44, %v777_v2  ;;  %v195_v30 = vsub.f32 %v1801_v17, %v2219_v4  ;;  %v207_v31 = vsub.f32 %v1803_v18, %v2218_v9 }
  0x3e   :  { %2263 = vst [vmem:[#allocation14_spill] sm:$0xff] %v1902_v21  ;;  %v842_v32 = vsub.f32 %v1805_v19, %v2217_v20  ;;  %1459 = vmatpush1.bf16.msra.mxu0 %v1902_v21  ;;  %v2224_v33 = vand.u32 4294901760, %v1809_v24  ;;  %v98_v38 = vsel %vm96_vm0, %v41_v10, 0  ;;  %v2227_v43 = vand.u32 4294901760, %v1813_v26 }
  0x3f   :  { %2264 = vst [vmem:[#allocation15_spill] sm:$0xff] %v1906_v11  ;;  %1555 = vmatpush1.bf16.msra.mxu1 %v1906_v11  ;;  %v2228_v44 = vand.u32 4294901760, %v1816_v28  ;;  %v196_v58 = vand.u32 4294901760, %v195_v30  ;;  %v208_v60 = vand.u32 4294901760, %v207_v31  ;;  %v1927_v2 = vand.u32 4294901760, %v98_v38 }
  0x40   :  { %v843_v1 = vand.u32 4294901760, %v842_v32  ;;  %v854_v20 = vsub.f32 %v1809_v24, %v2224_v33  ;;  %v201_v9 = vsub.f32 %v1813_v26, %v2227_v43  ;;  %v2231_v4 = vand.u32 4294901760, %v1822_v40 }
  0x41   :  { %v213_v10 = vsub.f32 %v1816_v28, %v2228_v44  ;;  %v1460_v0 = vpack.c.bf16 %v208_v60, %v196_v58  ;;  %v1940_v30 = vsub.f32 %v98_v38, %v1927_v2  ;;  %v2234_v31 = vand.u32 4294901760, %v1824_v41 }
  0x42   :  { %v2235_v32 = vand.u32 4294901760, %v1826_v42  ;;  %v855_v11 = vand.u32 4294901760, %v854_v20  ;;  %v202_v33 = vand.u32 4294901760, %v201_v9  ;;  %v848_v43 = vsub.f32 %v1822_v40, %v2231_v4 }
  0x43   :  { %v214_v21 = vand.u32 4294901760, %v213_v10  ;;  %1461 = vmatprep.subr.bf16.mxu0 %v1460_v0  ;;  %v1948_v44 = vand.u32 4294901760, %v1940_v30  ;;  %v860_v38 = vsub.f32 %v1824_v41, %v2234_v31  ;;  %v2239_v20 = vand.u32 4294901760, %v1830_v47 }
  0x44   :  { %v219_v58 = vsub.f32 %v1826_v42, %v2235_v32  ;;  %v1556_v9 = vpack.c.bf16 %v855_v11, %v843_v1  ;;  %v849_v10 = vand.u32 4294901760, %v848_v43  ;;  %v2238_v56 = vand.u32 4294901760, %v1834_v49 }
  0x45   :  { %2265 = vst [vmem:[#allocation16_spill] sm:$0xff] %v1948_v44  ;;  %v1462_v60 = vpack.c.bf16 %v214_v21, %v202_v33  ;;  %v184_v0 = vsub.f32 %v1940_v30, %v1948_v44  ;;  %v861_v4 = vand.u32 4294901760, %v860_v38  ;;  %v231_v31 = vsub.f32 %v1830_v47, %v2239_v20 }
  0x46   :  { %v220_v37 = vand.u32 4294901760, %v219_v58  ;;  %1557 = vmatprep.subr.bf16.mxu1 %v1556_v9  ;;  %v866_v32 = vsub.f32 %v1834_v49, %v2238_v56  ;;  %v2240_v11 = vand.u32 4294901760, %v1837_v51  ;;  %v2241_v21 = vand.u32 4294901760, %v1839_v53 }
  0x47   :  { %v2244_v33 = vand.u32 4294901760, %v1845_v62  ;;  %v185_v43 = vand.u32 4294901760, %v184_v0  ;;  %v1558_v1 = vpack.c.bf16 %v861_v4, %v849_v10  ;;  %v232_v44 = vand.u32 4294901760, %v231_v31 }
  0x48   :  { %v2245_v38 = vand.u32 4294901760, %v1847_v63  ;;  %v867_v58 = vand.u32 4294901760, %v866_v32  ;;  %v878_v9 = vsub.f32 %v1837_v51, %v2240_v11  ;;  %v225_v56 = vsub.f32 %v1839_v53, %v2241_v21 }
  0x49   :  { %v237_v20 = vsub.f32 %v1845_v62, %v2244_v33  ;;  %186 = vmatmul.mubr.f32.vlgmr.msra.gmra.mrb[0].mxu0 %v185_v43  ;;  %833 = vmatmul.mubr.f32.vlgmr.msra.gmra.mrb[0].mxu1 %v185_v43  ;;  %v1464_v0 = vpack.c.bf16 %v232_v44, %v220_v37  ;;  %v2246_v31 = vand.u32 4294901760, %v1851_v6  ;;  %v2249_v32 = vand.u32 4294901760, %v1855_v8 }
  0x4a   :  { %v872_v4 = vsub.f32 %v1847_v63, %v2245_v38  ;;  %1463 = vmatpush1.bf16.msra.mxu0 %v1462_v60  ;;  %1559 = vmatpush1.bf16.msra.mxu1 %v1558_v1  ;;  %v879_v10 = vand.u32 4294901760, %v878_v9  ;;  %v226_v11 = vand.u32 4294901760, %v225_v56  ;;  %v2247_v52 = vand.u32 4294901760, %v1858_v12 }
  0x4b   :  { %v238_v21 = vand.u32 4294901760, %v237_v20  ;;  %1465 = vmatprep.subr.bf16.mxu0 %v1464_v0  ;;  %v884_v37 = vsub.f32 %v1851_v6, %v2246_v31  ;;  %v243_v44 = vsub.f32 %v1855_v8, %v2249_v32  ;;  %v2248_v43 = vand.u32 4294901760, %v1862_v14 }
  0x4c   :  { %v873_v33 = vand.u32 4294901760, %v872_v4  ;;  %v2266_v38 = vmov 0.0   ;;  %v1560_v60 = vpack.c.bf16 %v879_v10, %v867_v58  ;;  %v255_v56 = vsub.f32 %v1858_v12, %v2247_v52 }
  0x4d   :  { %336 = vmatprep.mubr.f32.mxu0 %v2266_v38  ;;  %v1466_v1 = vpack.c.bf16 %v238_v21, %v226_v11  ;;  %v2250_v20 = vand.u32 4294901760, %v1864_v15  ;;  %983 = vmatprep.mubr.f32.mxu1 %v2266_v38  ;;  %v885_v9 = vand.u32 4294901760, %v884_v37  ;;  %v244_v0 = vand.u32 4294901760, %v243_v44 }
  0x4e   :  { %v890_v4 = vsub.f32 %v1862_v14, %v2248_v43  ;;  %v2252_v31 = vand.u32 4294901760, %v1871_v35  ;;  %1561 = vmatprep.subr.bf16.mxu1 %v1560_v60  ;;  %v256_v58 = vand.u32 4294901760, %v255_v56  ;;  %v2251_v21 = vand.u32 4294901760, %v1873_v36 }
  0x4f   :  { %1467 = vmatpush1.bf16.msra.mxu0 %v1466_v1  ;;  %v902_v11 = vsub.f32 %v1864_v15, %v2250_v20  ;;  %v2254_v10 = vand.u32 4294901760, %v1877_v45  ;;  %v1562_v52 = vpack.c.bf16 %v885_v9, %v873_v33  ;;  %v2253_v43 = vand.u32 4294901760, %v1879_v50 }
  0x50   :  { %v891_v37 = vand.u32 4294901760, %v890_v4  ;;  %v249_v44 = vsub.f32 %v1871_v35, %v2252_v31  ;;  %v1468_v32 = vpack.c.bf16 %v256_v58, %v244_v0  ;;  %v261_v1 = vsub.f32 %v1873_v36, %v2251_v21 }
  0x51   :  { %v903_v60 = vand.u32 4294901760, %v902_v11  ;;  %v896_v56 = vsub.f32 %v1877_v45, %v2254_v10  ;;  %1563 = vmatpush1.bf16.msra.mxu1 %v1562_v52  ;;  %v908_v33 = vsub.f32 %v1879_v50, %v2253_v43  ;;  %v2255_v9 = vand.u32 4294901760, %v1883_v54 }
  0x52   :  { %v250_v20 = vand.u32 4294901760, %v249_v44  ;;  %v2256_v4 = vand.u32 4294901760, %v1887_v55  ;;  %1469 = vmatprep.subr.bf16.mxu0 %v1468_v32  ;;  %v262_v58 = vand.u32 4294901760, %v261_v1  ;;  %v2257_v21 = vand.u32 4294901760, %v1891_v57 }
  0x53   :  { %v1564_v0 = vpack.c.bf16 %v903_v60, %v891_v37  ;;  %v897_v11 = vand.u32 4294901760, %v896_v56  ;;  %v909_v31 = vand.u32 4294901760, %v908_v33  ;;  %v267_v52 = vsub.f32 %v1883_v54, %v2255_v9 }
  0x54   :  { %v279_v44 = vsub.f32 %v1887_v55, %v2256_v4  ;;  %v925_v43 = vand.u32 4294901760, %v1894_v59  ;;  %v1470_v10 = vpack.c.bf16 %v262_v58, %v250_v20  ;;  %v914_v32 = vsub.f32 %v1891_v57, %v2257_v21 }
  0x55   :  { %1565 = vmatprep.subr.bf16.mxu1 %v1564_v0  ;;  %v2258_v37 = vand.u32 4294901760, %v1897_v3  ;;  %v2259_v60 = vand.u32 4294901760, %v1904_v22  ;;  %v1566_v1 = vpack.c.bf16 %v909_v31, %v897_v11  ;;  %v268_v56 = vand.u32 4294901760, %v267_v52 }
  0x56   :  { %v280_v33 = vand.u32 4294901760, %v279_v44  ;;  %v926_v9 = vsub.f32 %v1894_v59, %v925_v43  ;;  %1471 = vmatpush1.bf16.msra.mxu0 %v1470_v10  ;;  %v915_v4 = vand.u32 4294901760, %v914_v32  ;;  %v919_v58 = vand.u32 4294901760, %v1908_v27 }
  0x57   :  { %v273_v20 = vsub.f32 %v1897_v3, %v2258_v37  ;;  %v285_v0 = vsub.f32 %v1904_v22, %v2259_v60  ;;  %1567 = vmatpush1.bf16.msra.mxu1 %v1566_v1  ;;  %v931_v52 = vand.u32 4294901760, %v1910_v29  ;;  %v1476_v60 = vpack.c.bf16 %v1803_v18, %v1801_v17 }
  0x58   :  { %v1472_v31 = vpack.c.bf16 %v280_v33, %v268_v56  ;;  %v927_v11 = vand.u32 4294901760, %v926_v9  ;;  %v920_v10 = vsub.f32 %v1908_v27, %v919_v58  ;;  %v1572_v33 = vpack.c.bf16 %v1809_v24, %v1805_v19 }
  0x59   :  { %v274_v44 = vand.u32 4294901760, %v273_v20  ;;  %v286_v21 = vand.u32 4294901760, %v285_v0  ;;  %v932_v37 = vsub.f32 %v1910_v29, %v931_v52  ;;  %v1478_v20 = vpack.c.bf16 %v1816_v28, %v1813_v26 }
  0x5a   :  { %1473 = vmatprep.subr.bf16.mxu0 %v1472_v31  ;;  %v1568_v32 = vpack.c.bf16 %v927_v11, %v915_v4  ;;  %v921_v56 = vand.u32 4294901760, %v920_v10  ;;  %v1480_v4 = vpack.c.bf16 %v1830_v47, %v1826_v42  ;;  %v1482_v31 = vpack.c.bf16 %v1845_v62, %v1839_v53 }
  0x5b   :  { %v1474_v1 = vpack.c.bf16 %v286_v21, %v274_v44  ;;  %v933_v9 = vand.u32 4294901760, %v932_v37  ;;  %v1574_v21 = vpack.c.bf16 %v1824_v41, %v1822_v40  ;;  %v1576_v37 = vpack.c.bf16 %v1837_v51, %v1834_v49 }
  0x5c   :  { %1569 = vmatprep.subr.bf16.mxu1 %v1568_v32  ;;  %v1578_v11 = vpack.c.bf16 %v1851_v6, %v1847_v63  ;;  %v1580_v44 = vpack.c.bf16 %v1864_v15, %v1862_v14  ;;  %v1486_v10 = vpack.c.bf16 %v1873_v36, %v1871_v35  ;;  %v1488_v32 = vpack.c.bf16 %v1887_v55, %v1883_v54 }
  0x5d   :  { %1475 = vmatpush1.bf16.msra.mxu0 %v1474_v1  ;;  %v1570_v0 = vpack.c.bf16 %v933_v9, %v921_v56  ;;  %v1582_v1 = vpack.c.bf16 %v1879_v50, %v1877_v45  ;;  %v1584_v56 = vpack.c.bf16 %v1894_v59, %v1891_v57  ;;  %v1490_v9 = vpack.c.bf16 %v1904_v22, %v1897_v3 }
  0x5e   :  { %1477 = vmatprep.subr.bf16.mxu0 %v1476_v60  ;;  %v1484_v60 = vpack.c.bf16 %v1858_v12, %v1855_v8 }
  0x5f   :  { %1571 = vmatpush1.bf16.msra.mxu1 %v1570_v0  ;;  %v2269_v0 = vand.u32 4294901760, %v1803_v18  ;;  %v2278_v18 = vand.u32 4294901760, %v1830_v47  ;;  %v2286_v47 = vand.u32 4294901760, %v1845_v62  ;;  %v2292_v62 = vand.u32 4294901760, %v1864_v15 }
  0x60   :  { %338 = vmatmul.mubr.f32.vlgmr.msra.gmra.mrb[0].mxu0 %v1927_v2  ;;  %1573 = vmatprep.subr.bf16.mxu1 %v1572_v33  ;;  %v1586_v33 = vpack.c.bf16 %v1910_v29, %v1908_v27  ;;  %v2299_v15 = vand.u32 4294901760, %v1891_v57 }
  0x61   :  { %1479 = vmatpush1.bf16.msra.mxu0 %v1478_v20  ;;  %440 = vmatprep.mubr.f32.mxu0 %v2266_v38  ;;  %v2267_v20 = vld [vmem:[#allocation12_spill] sm:$0xff] }
  0x62   :  { %1481 = vmatprep.subr.bf16.mxu0 %v1480_v4  ;;  %985 = vmatmul.mubr.f32.vlgmr.msra.gmra.mrb[0].mxu1 %v1927_v2 }
  0x63   :  { %1575 = vmatpush1.bf16.msra.mxu1 %v1574_v21  ;;  %1087 = vmatprep.mubr.f32.mxu1 %v2266_v38  ;;  %v2270_v21 = vld [vmem:[#allocation11_spill] sm:$0xff] }
  0x64   :  { %1577 = vmatprep.subr.bf16.mxu1 %v1576_v37  ;;  %v2271_v37 = vld [vmem:[#allocation13_spill] sm:$0xff] }
  0x65   :  { %1483 = vmatpush1.bf16.msra.mxu0 %v1482_v31  ;;  %v2272_v31 = vld [vmem:[#allocation14_spill] sm:$0xff] }
  0x66   :  { %1485 = vmatprep.subr.bf16.mxu0 %v1484_v60  ;;  %v2273_v60 = vand.u32 4294901760, %v1805_v19  ;;  %v2281_v19 = vand.u32 4294901760, %v1822_v40  ;;  %v2288_v40 = vand.u32 4294901760, %v1858_v12  ;;  %v2293_v12 = vand.u32 4294901760, %v1871_v35 }
  0x67   :  { %1579 = vmatpush1.bf16.msra.mxu1 %v1578_v11  ;;  %v2274_v11 = vand.u32 4294901760, %v1809_v24  ;;  %v2282_v24 = vand.u32 4294901760, %v1824_v41  ;;  %v2289_v41 = vand.u32 4294901760, %v1847_v63  ;;  %v2295_v63 = vand.u32 4294901760, %v1883_v54 }
  0x68   :  { %1581 = vmatprep.subr.bf16.mxu1 %v1580_v44  ;;  %v1616_v35 = vpack.c.bf16 %v925_v43, %v2299_v15  ;;  %v2301_v54 = vand.u32 4294901760, %v1904_v22 }
  0x69   :  { %1487 = vmatpush1.bf16.msra.mxu0 %v1486_v10  ;;  %v1604_v44 = vpack.c.bf16 %v2274_v11, %v2273_v60  ;;  %v2275_v10 = vand.u32 4294901760, %v1813_v26  ;;  %v2283_v26 = vand.u32 4294901760, %v1834_v49  ;;  %v2287_v60 = vand.u32 4294901760, %v1855_v8 }
  0x6a   :  { %1489 = vmatprep.subr.bf16.mxu0 %v1488_v32  ;;  %v2276_v32 = vand.u32 4294901760, %v1816_v28  ;;  %v2284_v28 = vand.u32 4294901760, %v1837_v51  ;;  %v2290_v49 = vand.u32 4294901760, %v1851_v6  ;;  %v2296_v6 = vand.u32 4294901760, %v1887_v55 }
  0x6b   :  { %1583 = vmatpush1.bf16.msra.mxu1 %v1582_v1  ;;  %v1516_v11 = vpack.c.bf16 %v2288_v40, %v2287_v60 }
  0x6c   :  { %1585 = vmatprep.subr.bf16.mxu1 %v1584_v56  ;;  %v1510_v1 = vpack.c.bf16 %v2276_v32, %v2275_v10  ;;  %v1610_v51 = vpack.c.bf16 %v2290_v49, %v2289_v41  ;;  %v1520_v32 = vpack.c.bf16 %v2296_v6, %v2295_v63 }
  0x6d   :  { %1491 = vmatpush1.bf16.msra.mxu0 %v1490_v9  ;;  %v2279_v9 = vld [vmem:[#allocation15_spill] sm:$0xff] }
  0x6e   :  { %1493 = vmatprep.subr.bf16.mxu0 %v1799_v16 }
  0x6f   :  { %1587 = vmatpush1.bf16.msra.mxu1 %v1586_v33  ;;  %v2280_v33 = vld [vmem:[#allocation16_spill] sm:$0xff] }
  0x70   :  { %443 = vmatmul.mubr.f32.vlgmr.msra.gmra.mrb[0].mxu0 %v1940_v30  ;;  %1589 = vmatprep.subr.bf16.mxu1 %v1807_v23 }
  0x71   :  { %1495 = vmatpush1.bf16.msra.mxu0 %v1811_v25  ;;  %529 = vmatprep.mubr.f32.mxu0 %v2266_v38 }
  0x72   :  { %1497 = vmatprep.subr.bf16.mxu0 %v1828_v46  ;;  %1090 = vmatmul.mubr.f32.vlgmr.msra.gmra.mrb[0].mxu1 %v1940_v30  ;;  %v2268_v30 = vand.u32 4294901760, %v1801_v17  ;;  %v2277_v17 = vand.u32 4294901760, %v1826_v42  ;;  %v2285_v42 = vand.u32 4294901760, %v1839_v53  ;;  %v2291_v53 = vand.u32 4294901760, %v1862_v14 }
  0x73   :  { %1591 = vmatpush1.bf16.msra.mxu1 %v1820_v39  ;;  %1176 = vmatprep.mubr.f32.mxu1 %v2266_v38 }
  0x74   :  { %1593 = vmatprep.subr.bf16.mxu1 %v1832_v48  ;;  %v1508_v4 = vpack.c.bf16 %v2269_v0, %v2268_v30  ;;  %v1512_v56 = vpack.c.bf16 %v2278_v18, %v2277_v17  ;;  %v1606_v30 = vpack.c.bf16 %v2282_v24, %v2281_v19  ;;  %v1608_v0 = vpack.c.bf16 %v2284_v28, %v2283_v26 }
  0x75   :  { %1499 = vmatpush1.bf16.msra.mxu0 %v1843_v61  ;;  %v1612_v8 = vpack.c.bf16 %v2292_v62, %v2291_v53  ;;  %v2298_v17 = vand.u32 4294901760, %v1879_v50 }
  0x76   :  { %1501 = vmatprep.subr.bf16.mxu0 %v1853_v7 }
  0x77   :  { %1595 = vmatpush1.bf16.msra.mxu1 %v1849_v5 }
  0x78   :  { %1597 = vmatprep.subr.bf16.mxu1 %v1860_v13 }
  0x79   :  { %1503 = vmatpush1.bf16.msra.mxu0 %v1869_v34 }
  0x7a   :  { %1505 = vmatprep.subr.bf16.mxu0 %v2267_v20 }
  0x7b   :  { %1599 = vmatpush1.bf16.msra.mxu1 %v2270_v21 }
  0x7c   :  { %1601 = vmatprep.subr.bf16.mxu1 %v2271_v37 }
  0x7d   :  { %1507 = vmatpush1.bf16.msra.mxu0 %v2272_v31 }
  0x7e   :  { %1509 = vmatprep.subr.bf16.mxu0 %v1508_v4  ;;  %v1514_v4 = vpack.c.bf16 %v2286_v47, %v2285_v42 }
  0x7f   :  { %1603 = vmatpush1.bf16.msra.mxu1 %v2279_v9 }
  0x80   :  { %533 = vmatmul.mubr.f32.vlgmr.msra.gmra.mrb[0].mxu0 %v2280_v33  ;;  %1605 = vmatprep.subr.bf16.mxu1 %v1604_v44  ;;  %v2294_v44 = vand.u32 4294901760, %v1873_v36  ;;  %v2300_v36 = vand.u32 4294901760, %v1897_v3 }
  0x81   :  { %1511 = vmatpush1.bf16.msra.mxu0 %v1510_v1  ;;  %651 = vmatprep.mubr.f32.mxu0 %v2266_v38  ;;  %v2297_v1 = vand.u32 4294901760, %v1877_v45  ;;  %v1618_v45 = vpack.c.bf16 %v931_v52, %v919_v58 }
  0x82   :  { %1513 = vmatprep.subr.bf16.mxu0 %v1512_v56  ;;  %1180 = vmatmul.mubr.f32.vlgmr.msra.gmra.mrb[0].mxu1 %v2280_v33  ;;  %v1518_v10 = vpack.c.bf16 %v2294_v44, %v2293_v12  ;;  %v1522_v18 = vpack.c.bf16 %v2301_v54, %v2300_v36 }
  0x83   :  { %1607 = vmatpush1.bf16.msra.mxu1 %v1606_v30  ;;  %1298 = vmatprep.mubr.f32.mxu1 %v2266_v38  ;;  %v1614_v14 = vpack.c.bf16 %v2298_v17, %v2297_v1 }
  0x84   :  { %1609 = vmatprep.subr.bf16.mxu1 %v1608_v0 }
  0x85   :  { %1515 = vmatpush1.bf16.msra.mxu0 %v1514_v4 }
  0x86   :  { %1517 = vmatprep.subr.bf16.mxu0 %v1516_v11 }
  0x87   :  { %1611 = vmatpush1.bf16.msra.mxu1 %v1610_v51 }
  0x88   :  { %1613 = vmatprep.subr.bf16.mxu1 %v1612_v8 }
  0x89   :  { %1519 = vmatpush1.bf16.msra.mxu0 %v1518_v10 }
  0x8a   :  { %1521 = vmatprep.subr.bf16.mxu0 %v1520_v32 }
  0x8b   :  { %1615 = vmatpush1.bf16.msra.mxu1 %v1614_v14 }
  0x8c   :  { %1617 = vmatprep.subr.bf16.mxu1 %v1616_v35 }
  0x8d   :  { %1523 = vmatpush1.bf16.msra.mxu0 %v1522_v18 }
  0x8e   :  { %1525 = vmatprep.subr.bf16.mxu0 %v1799_v16  ;;  %v76_v16 = vlaneseq }
  0x8f   :  { %1619 = vmatpush1.bf16.msra.mxu1 %v1618_v45 }
  0x90   :  { %653 = vmatmul.mubr.f32.vlgmr.msra.gmra.mrb[0].mxu0 %v1927_v2  ;;  %1621 = vmatprep.subr.bf16.mxu1 %v1807_v23  ;;  %v77_v23 = vshrl.u32 %v76_v16, 7  ;;  %vm1425_vm1 = vcmp.lt.s32.totalorder %v76_v16, 512 }
  0x91   :  { %1527 = vmatpush1.bf16.msra.mxu0 %v1811_v25  ;;  %739 = vmatprep.mubr.f32.mxu0 %v2266_v38 }
  0x92   :  { %1529 = vmatprep.subr.bf16.mxu0 %v1828_v46  ;;  %1300 = vmatmul.mubr.f32.vlgmr.msra.gmra.mrb[0].mxu1 %v1927_v2  ;;  %v78_v25 = vsub.s32 0, %v77_v23  ;;  %v82_v46 = vsub.s32 1, %v77_v23 }
  0x93   :  { %1623 = vmatpush1.bf16.msra.mxu1 %v1820_v39  ;;  %1386 = vmatprep.mubr.f32.mxu1 %v2266_v38  ;;  %v74_v39 = vld [vmem:[%s2215_s2] sm:$0xf]  ;;  %s1745_s2 = smov [#allocation7]  }
  0x94   :  { %1625 = vmatprep.subr.bf16.mxu1 %v1832_v48  ;;  %v1744_v48 = vmov 1966171168   ;;  %s1434_s12 = sshll.u32 %s1745_s2, 4  ;;  %s1435_s12 = int_to_ptr.vmem [resolvable:$true] %s1434_s12 }
  0x95   :  { %1531 = vmatpush1.bf16.msra.mxu0 %v1843_v61  ;;  %v1401_v61 = vunpack.c.l.s4 %v1744_v48  ;;  %s1711_s13 = scalar_lea.vmem %s1435_s12, 64  ;;  %p1716_p3 = scmp.lt.s32.totalorder %s1435_s12, %s1435_s12 }
  0x96   :  { %1533 = vmatprep.subr.bf16.mxu0 %v1853_v7  ;;  %v79_v7 = vrot.slane %v74_v39, %v78_v25  ;;  %p1712_p2 = scmp.ne.s32.totalorder %s1435_s12, %s1711_s13  ;;  %p1717_p4 = scmp.lt.s32.totalorder %s1711_s13, %s1711_s13 }
  0x97   :  { %1627 = vmatpush1.bf16.msra.mxu1 %v1849_v5  ;;  %v86_v5 = vsub.s32 2, %v77_v23  ;;  %v1402_v50 = vunpack.c.0.s8 %v1401_v61 }
  0x98   :  { %1629 = vmatprep.subr.bf16.mxu1 %v1860_v13  ;;  %v90_v13 = vsub.s32 3, %v77_v23  ;;  %p1718_p5 = por %p1717_p4, %p1716_p3 }
  0x99   :  { %1535 = vmatpush1.bf16.msra.mxu0 %v1869_v34  ;;  %v83_v34 = vrot.slane %v74_v39, %v82_v46  ;;  %v87_v57 = vrot.slane %v74_v39, %v86_v5 }
  0x9a   :  { %1537 = vmatprep.subr.bf16.mxu0 %v2267_v20  ;;  %v91_v22 = vrot.slane %v74_v39, %v90_v13  ;;  %p1719_p6 = pnand %p1718_p5, %p1712_p2 }
  0x9b   :  { %1631 = vmatpush1.bf16.msra.mxu1 %v2270_v21 }
  0x9c   :  { %1633 = vmatprep.subr.bf16.mxu1 %v2271_v37 }
  0x9d   :  { %1539 = vmatpush1.bf16.msra.mxu0 %v2272_v31 }
  0x9f   :  { %1635 = vmatpush1.bf16.msra.mxu1 %v2279_v9 }
  0xa0   :  { %741 = vmatmul.mubr.f32.vlgmr.msra.gmra.mrb[0].mxu0 %v1927_v2 }
  0xa2   :  { %1388 = vmatmul.mubr.f32.vlgmr.msra.gmra.mrb[0].mxu1 %v1927_v2  ;;  %v1405_v2 = vsub.s32 %v1402_v50, %v77_v23 }
 0x173   :  { %v742_v55 = vpop.f32.mrb[0].mxu0 }
 0x174   :  { %v1636_v59 = vadd.f32 %v742_v55, %v79_v7  ;;  %v744_v3 = vpop.f32.mrb[1].mxu0 }
 0x175   :  { %v1637_v27 = vadd.f32 %v744_v3, %v83_v34  ;;  %v1389_v29 = vpop.f32.mrb[0].mxu1 }
 0x176   :  { %v1638_v38 = vadd.f32 %v1389_v29, %v87_v57  ;;  %v1391_v58 = vpop.f32.mrb[1].mxu1 }
 0x177   :  { %v1398_v43 = vcombine.low %v1636_v59, %v1637_v27  ;;  %v1639_v52 = vadd.f32 %v1391_v58, %v91_v22 }
 0x179   :  { %v1406_v20 = vrot.slane %v1398_v43, %v1405_v2  ;;  %v1399_v21 = vcombine.low %v1638_v38, %v1639_v52 }
 0x17b   :  { %v1413_v37 = vrot.slane %v1399_v21, %v1405_v2 }
 0x17d   :  { %v1414_v31 = vcombine.low %v1406_v20, %v1413_v37 }
 0x17f   :  { %v1421_v56 = vrot.slane %v1414_v31, %v1405_v2 }
 0x181   :  { %1427 = vst.msk [vmem:[#allocation7] sm:$0xf] %vm1425_vm1, %v1421_v56 }
 0x182   :  { %1722 = shalt.err (!%p1719_p6)
}
 0x183   :  { %s1723_s16 = scalar_lea.hbm %s2216_s3, 64 }
 0x184   :  { %p1724_p7 = scmp.ne.s32.totalorder %s2216_s3, %s1723_s16  ;;  %p1727_p8 = scmp.lt.u32.totalorder %s1723_s16, %s2216_s3 }
 0x186   :  { %p1729_p9 = pnand %p1727_p8, %p1724_p7 }
 0x188   :  { %1732 = shalt.err (!%p1729_p9)
}
 0x189   :  { %1437 = dma.vmem_to_hbm [thread:$0]  %s1435_s12, 64, %s2216_s3, [#allocation4]  }
 0x18a   :  { %1737 = dma.done.wait [#allocation4], 64  }
 0x18b   :  { %1738 = vsyncadd [#allocation4], 4294967232 }
 0x18c   :  { %1441 = vsyncpa [#allocation3], 1 }
 0x18d   :  { %1442 = vsyncpa [#allocation6], 1 }
 0x18e   :  { %1443 = vsyncpa [#allocation4], 1 }

</bundles_post_ra>
